<compile_context>
chip_gen: v7x
topology: tpu7x:2x2x1
jax: 0.10.0
libtpu: 0.0.40
codegen_flags: <defaults>
</compile_context>

<pallas_src>
import functools

import jax
import jax.numpy as jnp
from jax.experimental import pallas as pl
from jax.experimental.pallas import tpu as pltpu

ALPHA = 1.0
GAMMA = 2                 # module default; the square is written out explicitly
SCALE = 10.0
LANES = 128
SUBLANES = 8
MAX_BLOCK_ROWS = 16384            # absolute cap on rows per block
VMEM_INPUT_BUDGET = 16 * 1024 * 1024   # double-buffered input bytes per step
VMEM_LIMIT_BYTES = 32 * 1024 * 1024    # explicit; safe on v5e/v6e/v7x


def _round_up(x, m):
    return (x + m - 1) // m * m


def _ceil_div(x, m):
    return -(-x // m)


def _sublane_granularity(dtype):
    # f32 -> 8 rows per vreg tile, bf16 -> 16, int8/fp8 -> 32.
    return SUBLANES * max(1, 4 // jnp.dtype(dtype).itemsize)


def _focal_elementwise(p, t, binary_targets):
    """Per-element focal term (without alpha / *10): (1 - pt)**2 * ce."""
    if binary_targets:
        # Fast path for hard 0/1 labels: one transcendental per element.
        pt = jnp.where(t >= 0.5, p, 1.0 - p)
        ce = -jnp.maximum(jnp.log(pt), -100.0)
        one_m_pt = 1.0 - pt
    else:
        # Exact PyTorch BCE path (log terms clamped at -100); correct for
        # soft (non-binary) targets as well.
        log_p = jnp.maximum(jnp.log(p), -100.0)
        log_1mp = jnp.maximum(jnp.log(1.0 - p), -100.0)
        ce = -(t * log_p + (1.0 - t) * log_1mp)
        one_m_pt = 1.0 - jnp.exp(-ce)
    return one_m_pt * one_m_pt * ce   # gamma == 2 as explicit multiply (no pow)


def _focal_sum_kernel(p_ref, t_ref, o_ref, *, rows_main, block_rows, bpc,
                      total_blocks, binary_targets, mask_last_block,
                      skip_oob_steps):
    c = pl.program_id(0)          # parallel (core) axis
    i = pl.program_id(1)          # reduction axis (resident output block)

    # Zero this core's resident accumulator block on its first reduction step.
    @pl.when(i == 0)
    def _():
        o_ref[...] = jnp.zeros_like(o_ref)

    block_idx = c * bpc + i

    def fold(mask_rows):
        p = p_ref[...].astype(jnp.float32)
        t = t_ref[...].astype(jnp.float32)
        focal = _focal_elementwise(p, t, binary_targets)
        if mask_rows:
            # Single select on focal (NOT a multiply): padded rows may hold
            # garbage/NaN and 0*NaN would poison the accumulator.
            row_ids = block_idx * block_rows + jax.lax.broadcasted_iota(
                jnp.int32, (block_rows, LANES), 0)
            focal = jnp.where(row_ids < rows_main, focal, 0.0)
        # Fold the (block_rows, 128) tile into the vreg-shaped accumulator
        # with pure VPU adds - no cross-lane (XLU) work in the hot loop.
        # Note: this reshape stays within (8,128) tile boundaries, so it
        # should lower as a vreg relabel + add tree rather than a VMEM copy.
        partial = focal.reshape(block_rows // SUBLANES, SUBLANES, LANES).sum(axis=0)
        o_ref[...] += partial[None, :, :]

    if mask_last_block:
        # Only the last logical block has padded rows; everything else runs
        # the mask-free path. Both conditions also exclude the duplicate
        # (out-of-range) steps of the parallel split.
        @pl.when(block_idx == total_blocks - 1)
        def _():
            fold(mask_rows=True)

        @pl.when(block_idx < total_blocks - 1)
        def _():
            fold(mask_rows=False)
    elif skip_oob_steps:
        @pl.when(block_idx < total_blocks)
        def _():
            fold(mask_rows=False)
    else:
        fold(mask_rows=False)


def _make_in_map(bpc, total_blocks):
    def in_map(c, i):
        base = c * bpc
        # Last valid reduction step for this core; extra steps repeat that
        # same block index so the pipeline keeps the resident buffer (same
        # index on consecutive steps -> no re-DMA from HBM).
        last_valid = jnp.maximum(
            jnp.minimum(total_blocks - 1 - base, bpc - 1), 0)
        return (base + jnp.minimum(i, last_valid), 0)
    return in_map


def focal_loss(inputs, targets, reduction="mean", *, binary_targets=False,
               max_block_rows=MAX_BLOCK_ROWS, num_splits=2):
    """inputs/targets: probability tensors of identical shape (e.g. NCHW)."""
    assert inputs.shape == targets.shape
    if reduction not in ("mean", "sum"):
        # TODO(synk): reduction='none' needs the per-element focal map written
        # back instead of the reduced accumulator; only mean/sum implemented.
        raise NotImplementedError("reduction='none' not implemented")

    n_elem = int(inputs.size)

    # Metadata-only flatten; inputs stay in native dtype (cast in-kernel).
    p = inputs.reshape(-1)
    t = targets.reshape(-1)

    gran = max(_sublane_granularity(p.dtype), _sublane_granularity(t.dtype))

    rows = n_elem // LANES
    rows_main = (rows // gran) * gran          # rows handled by the kernel
    main_elems = rows_main * LANES

    total = jnp.float32(0.0)

    # Sub-tile tail (< gran*128 + 128 elements) is folded in plain JAX: no
    # padded copy of the full inputs, and the common 128/gran-divisible case
    # performs zero extra HBM copies.
    if main_elems < n_elem:
        p_tail = p[main_elems:].astype(jnp.float32)
        t_tail = t[main_elems:].astype(jnp.float32)
        total = total + jnp.sum(_focal_elementwise(p_tail, t_tail, binary_targets))

    if rows_main > 0:
        if main_elems < n_elem:
            p_main = p[:main_elems]
            t_main = t[:main_elems]
        else:
            p_main, t_main = p, t
        p2 = p_main.reshape(rows_main, LANES)
        t2 = t_main.reshape(rows_main, LANES)

        # Block size: as big as the double-buffered VMEM budget allows,
        # dtype-aware granularity, never larger than the array itself.
        itemsize_sum = (jnp.dtype(p2.dtype).itemsize
                        + jnp.dtype(t2.dtype).itemsize)
        budget_rows = VMEM_INPUT_BUDGET // (2 * LANES * itemsize_sum)
        cap = min(max_block_rows, MAX_BLOCK_ROWS, budget_rows)
        cap = max(gran, (cap // gran) * gran)
        block_rows = min(rows_main, cap)

        total_blocks = _ceil_div(rows_main, block_rows)
        splits = num_splits if total_blocks >= num_splits else 1
        bpc = _ceil_div(total_blocks, splits)
        mask_last_block = (rows_main % block_rows) != 0
        skip_oob_steps = (splits * bpc) > total_blocks

        kernel = functools.partial(
            _focal_sum_kernel,
            rows_main=rows_main, block_rows=block_rows, bpc=bpc,
            total_blocks=total_blocks, binary_targets=binary_targets,
            mask_last_block=mask_last_block, skip_oob_steps=skip_oob_steps)

        in_map = _make_in_map(bpc, total_blocks)

        partials = pl.pallas_call(
            kernel,
            out_shape=jax.ShapeDtypeStruct((splits, SUBLANES, LANES),
                                           jnp.float32),
            grid_spec=pltpu.PrefetchScalarGridSpec(
                num_scalar_prefetch=0,
                grid=(splits, bpc),
                in_specs=[
                    pl.BlockSpec((block_rows, LANES), in_map),
                    pl.BlockSpec((block_rows, LANES), in_map),
                ],
                out_specs=pl.BlockSpec((1, SUBLANES, LANES),
                                       lambda c, i: (c, 0, 0)),
            ),
            compiler_params=pltpu.CompilerParams(
                dimension_semantics=("parallel", "arbitrary"),
                vmem_limit_bytes=VMEM_LIMIT_BYTES,
            ),
        )(p2, t2)

        # Single final cross-lane reduce.
        total = total + jnp.sum(partials)

    # Hoisted constant scaling.
    total = total * jnp.float32(ALPHA * SCALE)

    if reduction == "mean":
        return total / jnp.float32(n_elem)
    return total


if __name__ == "__main__":
    key = jax.random.PRNGKey(0)

    def ref_loss(inputs, targets, reduction="mean"):
        p = inputs.astype(jnp.float32)
        t = targets.astype(jnp.float32)
        log_p = jnp.maximum(jnp.log(p), -100.0)
        log_1mp = jnp.maximum(jnp.log(1.0 - p), -100.0)
        ce = -(t * log_p + (1.0 - t) * log_1mp)
        fl = ALPHA * (1.0 - jnp.exp(-ce)) ** GAMMA * ce * SCALE
        return jnp.mean(fl) if reduction == "mean" else jnp.sum(fl)

    def make_inputs(k, shape, hard_targets=True, target_dtype=jnp.float32):
        k1, k2 = jax.random.split(k)
        p = jax.nn.sigmoid(jax.random.normal(k1, shape, jnp.float32))
        if hard_targets:
            t = (jax.random.uniform(k2, shape) > 0.5).astype(target_dtype)
        else:
            t = jax.random.uniform(k2, shape).astype(target_dtype)
        return p, t

    keys = jax.random.split(key, 5)
    checks = []

    # 1) Primary NCHW case (batch=2, channels=4, 16x16), 128-divisible, mean.
    p1, t1 = make_inputs(keys[0], (2, 4, 16, 16))
    checks.append((focal_loss(p1, t1, "mean"), ref_loss(p1, t1, "mean")))

    # 2) Sum reduction.
    checks.append((focal_loss(p1, t1, "sum"), ref_loss(p1, t1, "sum")))

    # 3) Binary-target fast path (one transcendental) on hard labels.
    checks.append((focal_loss(p1, t1, "mean", binary_targets=True),
                   ref_loss(p1, t1, "mean")))

    # 4) Soft (non-binary) targets on the exact default path.
    p4, t4 = make_inputs(keys[1], (2, 4, 16, 16), hard_targets=False)
    checks.append((focal_loss(p4, t4, "mean"), ref_loss(p4, t4, "mean")))

    # 5) Element count not divisible by 128: plain-JAX tail path.
    p5, t5 = make_inputs(keys[2], (2, 3, 50, 7))          # 2100 elements
    checks.append((focal_loss(p5, t5, "mean"), ref_loss(p5, t5, "mean")))

    # 6) Multi-block + core split + partial last block + duplicate-step skip
    #    (exercised at small size via max_block_rows override).
    p6, t6 = make_inputs(keys[3], (5, 8, 128))            # 40 rows of 128
    checks.append((focal_loss(p6, t6, "mean", max_block_rows=16),
                   ref_loss(p6, t6, "mean")))

    # 7) bf16 targets (exact for 0/1 labels) with dtype-aware granularity.
    p7, t7 = make_inputs(keys[4], (2, 4, 16, 16), target_dtype=jnp.bfloat16)
    checks.append((focal_loss(p7, t7, "mean"), ref_loss(p7, t7, "mean")))

    for got, want in checks:
        jax.block_until_ready(got)
        assert jnp.allclose(got, want, rtol=1e-5, atol=1e-5), (got, want)

    print("KERNEL_OK")
</pallas_src>

<mosaic_0001>
module attributes {stable_mosaic.version = 11 : i64} {
  func.func @_focal_sum_kernel(%arg0: i32, %arg1: i32, %arg2: memref<16x128xf32, #tpu.memory_space<vmem>>, %arg3: memref<16x128xf32, #tpu.memory_space<vmem>>, %arg4: memref<1x8x128xf32, #tpu.memory_space<vmem>>) attributes {dimension_semantics = [#tpu.dimension_semantics<parallel>, #tpu.dimension_semantics<arbitrary>], iteration_bounds = array<i64: 1, 1>, scalar_prefetch = 0 : i64, scratch_operands = 0 : i64, tpu.core_type = #tpu.core_type<tc>, window_params = [{transform_indices = @transform_0, window_bounds = array<i64: 16, 128>}, {transform_indices = @transform_1, window_bounds = array<i64: 16, 128>}, {transform_indices = @transform_2, window_bounds = array<i64: 1, 8, 128>}]} {
    %c0_i32 = arith.constant 0 : i32
    %0 = arith.cmpi eq, %arg1, %c0_i32 : i32
    %1 = arith.extui %0 : i1 to i32
    %c0_i32_0 = arith.constant 0 : i32
    %2 = arith.cmpi ne, %1, %c0_i32_0 : i32
    scf.if %2 {
      %cst_17 = arith.constant 0.000000e+00 : f32
      %33 = vector.broadcast %cst_17 : f32 to vector<1x8x128xf32>
      %c0_18 = arith.constant 0 : index
      %c0_19 = arith.constant 0 : index
      %c0_20 = arith.constant 0 : index
      %34 = vector.load %arg4[%c0_18, %c0_19, %c0_20] : memref<1x8x128xf32, #tpu.memory_space<vmem>>, vector<1x8x128xf32>
      tpu.vector_store %arg4[%c0_18, %c0_19, %c0_20], %33 {strides = array<i32>} : memref<1x8x128xf32, #tpu.memory_space<vmem>>, vector<1x8x128xf32>,
    } else {
    }
    %c0 = arith.constant 0 : index
    %c0_1 = arith.constant 0 : index
    %3 = vector.load %arg2[%c0, %c0_1] : memref<16x128xf32, #tpu.memory_space<vmem>>, vector<16x128xf32>
    %c0_2 = arith.constant 0 : index
    %c0_3 = arith.constant 0 : index
    %4 = vector.load %arg3[%c0_2, %c0_3] : memref<16x128xf32, #tpu.memory_space<vmem>>, vector<16x128xf32>
    %5 = math.log %3 : vector<16x128xf32>
    %cst = arith.constant -1.000000e+02 : f32
    %6 = vector.broadcast %cst : f32 to vector<16x128xf32>
    %7 = arith.maximumf %5, %6 : vector<16x128xf32>
    %cst_4 = arith.constant 1.000000e+00 : f32
    %8 = vector.broadcast %cst_4 : f32 to vector<16x128xf32>
    %9 = arith.subf %8, %3 : vector<16x128xf32>
    %10 = math.log %9 : vector<16x128xf32>
    %cst_5 = arith.constant -1.000000e+02 : f32
    %11 = vector.broadcast %cst_5 : f32 to vector<16x128xf32>
    %12 = arith.maximumf %10, %11 : vector<16x128xf32>
    %13 = arith.mulf %4, %7 : vector<16x128xf32>
    %cst_6 = arith.constant 1.000000e+00 : f32
    %14 = vector.broadcast %cst_6 : f32 to vector<16x128xf32>
    %15 = arith.subf %14, %4 : vector<16x128xf32>
    %16 = arith.mulf %15, %12 : vector<16x128xf32>
    %17 = arith.addf %13, %16 : vector<16x128xf32>
    %cst_7 = arith.constant 0.000000e+00 : f32
    %18 = vector.broadcast %cst_7 : f32 to vector<16x128xf32>
    %19 = arith.subf %18, %17 : vector<16x128xf32>
    %cst_8 = arith.constant 0.000000e+00 : f32
    %20 = vector.broadcast %cst_8 : f32 to vector<16x128xf32>
    %21 = arith.subf %20, %19 : vector<16x128xf32>
    %22 = math.exp %21 : vector<16x128xf32>
    %cst_9 = arith.constant 1.000000e+00 : f32
    %23 = vector.broadcast %cst_9 : f32 to vector<16x128xf32>
    %24 = arith.subf %23, %22 : vector<16x128xf32>
    %25 = arith.mulf %24, %24 : vector<16x128xf32>
    %26 = arith.mulf %25, %19 : vector<16x128xf32>
    %27 = vector.shape_cast %26 : vector<16x128xf32> to vector<2x8x128xf32>
    %cst_10 = arith.constant dense<0.000000e+00> : vector<8x128xf32>
    %28 = vector.multi_reduction <add>, %27, %cst_10 [0] : vector<2x8x128xf32> to vector<8x128xf32>
    %c0_11 = arith.constant 0 : index
    %c0_12 = arith.constant 0 : index
    %c0_13 = arith.constant 0 : index
    %29 = vector.load %arg4[%c0_11, %c0_12, %c0_13] : memref<1x8x128xf32, #tpu.memory_space<vmem>>, vector<1x8x128xf32>
    %30 = vector.shape_cast %28 : vector<8x128xf32> to vector<1x8x128xf32>
    %31 = arith.addf %29, %30 : vector<1x8x128xf32>
    %c0_14 = arith.constant 0 : index
    %c0_15 = arith.constant 0 : index
    %c0_16 = arith.constant 0 : index
    %32 = vector.load %arg4[%c0_14, %c0_15, %c0_16] : memref<1x8x128xf32, #tpu.memory_space<vmem>>, vector<1x8x128xf32>
    tpu.vector_store %arg4[%c0_14, %c0_15, %c0_16], %31 {strides = array<i32>} : memref<1x8x128xf32, #tpu.memory_space<vmem>>, vector<1x8x128xf32>,
    return
  }
  func.func @transform_0(%arg0: i32, %arg1: i32) -> (i32, i32) {
    %c1_i32 = arith.constant 1 : i32
    %0 = arith.muli %arg0, %c1_i32 : i32
    %c0_i32 = arith.constant 0 : i32
    %1 = arith.subi %c0_i32, %0 : i32
    %c0_i32_0 = arith.constant 0 : i32
    %2 = arith.minsi %1, %c0_i32_0 : i32
    %c0_i32_1 = arith.constant 0 : i32
    %3 = arith.maxsi %2, %c0_i32_1 : i32
    %4 = arith.minsi %arg1, %3 : i32
    %5 = arith.addi %0, %4 : i32
    %c0_i32_2 = arith.constant 0 : i32
    %c0_i32_3 = arith.constant 0 : i32
    return %5, %c0_i32_2 : i32, i32
  }
  func.func @transform_1(%arg0: i32, %arg1: i32) -> (i32, i32) {
    %c1_i32 = arith.constant 1 : i32
    %0 = arith.muli %arg0, %c1_i32 : i32
    %c0_i32 = arith.constant 0 : i32
    %1 = arith.subi %c0_i32, %0 : i32
    %c0_i32_0 = arith.constant 0 : i32
    %2 = arith.minsi %1, %c0_i32_0 : i32
    %c0_i32_1 = arith.constant 0 : i32
    %3 = arith.maxsi %2, %c0_i32_1 : i32
    %4 = arith.minsi %arg1, %3 : i32
    %5 = arith.addi %0, %4 : i32
    %c0_i32_2 = arith.constant 0 : i32
    %c0_i32_3 = arith.constant 0 : i32
    return %5, %c0_i32_2 : i32, i32
  }
  func.func @transform_2(%arg0: i32, %arg1: i32) -> (i32, i32, i32) {
    %c0_i32 = arith.constant 0 : i32
    %c0_i32_0 = arith.constant 0 : i32
    %c0_i32_1 = arith.constant 0 : i32
    return %arg0, %c0_i32, %c0_i32_0 : i32, i32, i32
  }
}

</mosaic_0001>

<bundles_post_ra>
// kernel: tpu_custom_call.1
= control target key start
LH: loop header
LB: loop body
LE: loop exit
PB: predicated region body
PF: predicated region fallthrough
CT: control target
= control target key end

     0   :  { %7 = vsyncpa [#allocation3], 0  ;;  %s295_s0 = inlined_call_operand.hbm [shape: f32[16,128], index: 0, kind: input, shape index: {}]   ;;  %s296_s1 = inlined_call_operand.hbm [shape: f32[16,128], index: 1, kind: input, shape index: {}]   ;;  %s297_s2 = inlined_call_operand.hbm [shape: f32[1,8,128], index: 2, kind: output, shape index: {}]  }
   0x1   :  { %8 = vsyncpa [#allocation6], 0 }
   0x2   :  { %9 = vsyncpa [#allocation4], 0  ;;  %s239_s9 = smov [#allocation2]   ;;  %s167_s13 = scalar_lea.hbm %s295_s0, 256 }
   0x3   :  { %s26_s10 = sshll.u32 %s239_s9, 4  ;;  %p168_p0 = scmp.ne.s32.totalorder %s295_s0, %s167_s13  ;;  %s27_s10 = int_to_ptr.vmem [resolvable:$true] %s26_s10 }
   0x4   :  { %p171_p1 = scmp.lt.u32.totalorder %s167_s13, %s295_s0 }
   0x6   :  { %p173_p2 = pnand %p171_p1, %p168_p0 }
   0x8   :  { %176 = shalt.err (!%p173_p2)
}
   0x9   :  { %s177_s18 = scalar_lea.vmem %s27_s10, 256  ;;  %p182_p4 = scmp.lt.s32.totalorder %s27_s10, %s27_s10 }
   0xa   :  { %p178_p3 = scmp.ne.s32.totalorder %s27_s10, %s177_s18  ;;  %p183_p5 = scmp.lt.s32.totalorder %s177_s18, %s177_s18 }
   0xc   :  { %p184_p6 = por %p183_p5, %p182_p4 }
   0xe   :  { %p185_p7 = pnand %p184_p6, %p178_p3 }
  0x10   :  { %188 = shalt.err (!%p185_p7)
}
  0x11   :  { %s240_s19 = smov 128   ;;  %s241_s20 = smov 8  }
  0x12   :  { %32 = dma.hbm_to_vmem [thread:$0]  %s295_s0, 256, %s27_s10, [#allocation3], %s240_s19, %s240_s19, %s241_s20  }
  0x13   :  { %s242_s23 = smov [#allocation5]   ;;  %s189_s27 = scalar_lea.hbm %s296_s1, 256 }
  0x14   :  { %s49_s24 = sshll.u32 %s242_s23, 4  ;;  %p190_p8 = scmp.ne.s32.totalorder %s296_s1, %s189_s27  ;;  %s50_s24 = int_to_ptr.vmem [resolvable:$true] %s49_s24 }
  0x15   :  { %p193_p9 = scmp.lt.u32.totalorder %s189_s27, %s296_s1 }
  0x17   :  { %p195_p10 = pnand %p193_p9, %p190_p8 }
  0x19   :  { %198 = shalt.err (!%p195_p10)
}
  0x1a   :  { %s199_s4 = scalar_lea.vmem %s50_s24, 256  ;;  %p204_p12 = scmp.lt.s32.totalorder %s50_s24, %s50_s24 }
  0x1b   :  { %p200_p11 = scmp.ne.s32.totalorder %s50_s24, %s199_s4  ;;  %p205_p13 = scmp.lt.s32.totalorder %s199_s4, %s199_s4 }
  0x1d   :  { %p206_p0 = por %p205_p13, %p204_p12 }
  0x1f   :  { %p207_p1 = pnand %p206_p0, %p200_p11 }
  0x21   :  { %210 = shalt.err (!%p207_p1)
}
  0x22   :  { %55 = dma.hbm_to_vmem [thread:$0]  %s296_s1, 256, %s50_s24, [#allocation6], %s240_s19, %s240_s19, %s241_s20  }
  0x23   :  { %233 = dma.done.wait [#allocation3], 256  }
  0x24   :  { %234 = vsyncadd [#allocation3], 4294967040 }
  0x25   :  { %235 = dma.done.wait [#allocation6], 256  }
  0x26   :  { %236 = vsyncadd [#allocation6], 4294967040  ;;  %v85_v0 = vld [vmem:[#allocation2] sm:$0xff]  ;;  %v86_v1 = vld [vmem:[#allocation2 + $0x8] sm:$0xff]  ;;  %s243_s1 = smov [#allocation7]  }
  0x27   :  { %155 = vlog2.f32 %v85_v0  ;;  %v95_v2 = vsub.f32 1.0, %v85_v0  ;;  %v96_v3 = vsub.f32 1.0, %v86_v1  ;;  %v87_v5 = vld [vmem:[#allocation5] sm:$0xff]  ;;  %v88_v7 = vld [vmem:[#allocation5 + $0x8] sm:$0xff]  ;;  %s135_s6 = sshll.u32 %s243_s1, 4  ;;  %s136_s6 = int_to_ptr.vmem [resolvable:$true] %s135_s6 }
  0x28   :  { %157 = vlog2.f32 %v86_v1  ;;  %v105_v14 = vsub.f32 1.0, %v87_v5  ;;  %v106_v17 = vsub.f32 1.0, %v88_v7  ;;  %s211_s7 = scalar_lea.vmem %s136_s6, 128  ;;  %p216_p3 = scmp.lt.s32.totalorder %s136_s6, %s136_s6 }
  0x29   :  { %159 = vlog2.f32 %v95_v2  ;;  %p212_p2 = scmp.ne.s32.totalorder %s136_s6, %s211_s7  ;;  %p217_p4 = scmp.lt.s32.totalorder %s211_s7, %s211_s7 }
  0x2a   :  { %161 = vlog2.f32 %v96_v3 }
  0x2b   :  { %p218_p5 = por %p217_p4, %p216_p3 }
  0x2d   :  { %p219_p6 = pnand %p218_p5, %p212_p2 }
  0x31   :  { %v156_v4 = vpop.eup %155 }
  0x32   :  { %v158_v6 = vpop.eup %157  ;;  %v90_v8 = vmul.f32 0.6931472, %v156_v4 }
  0x33   :  { %v160_v9 = vpop.eup %159  ;;  %v92_v10 = vmul.f32 0.6931472, %v158_v6 }
  0x34   :  { %v162_v11 = vpop.eup %161  ;;  %v93_v12 = vmax.f32 %v90_v8, -100.0  ;;  %v98_v13 = vmul.f32 0.6931472, %v160_v9 }
  0x35   :  { %v94_v15 = vmax.f32 %v92_v10, -100.0  ;;  %v100_v16 = vmul.f32 0.6931472, %v162_v11 }
  0x36   :  { %v101_v18 = vmax.f32 %v98_v13, -100.0  ;;  %v103_v19 = vmul.f32 %v93_v12, %v87_v5 }
  0x37   :  { %v102_v20 = vmax.f32 %v100_v16, -100.0  ;;  %v104_v21 = vmul.f32 %v94_v15, %v88_v7 }
  0x38   :  { %v107_v22 = vmul.f32 %v105_v14, %v101_v18 }
  0x39   :  { %v108_v23 = vmul.f32 %v106_v17, %v102_v20 }
  0x3a   :  { %v109_v24 = vadd.f32 %v107_v22, %v103_v19 }
  0x3b   :  { %v110_v25 = vadd.f32 %v108_v23, %v104_v21 }
  0x3c   :  { %v111_v26 = vsub.f32 0.0, %v109_v24 }
  0x3d   :  { %v112_v27 = vsub.f32 0.0, %v110_v25 }
  0x3e   :  { %v113_v28 = vsub.f32 0.0, %v111_v26 }
  0x3f   :  { %v114_v29 = vsub.f32 0.0, %v112_v27 }
  0x40   :  { %v115_v30 = vmul.f32 1.442695, %v113_v28 }
  0x41   :  { %v117_v31 = vmul.f32 1.442695, %v114_v29 }
  0x42   :  { %163 = vpow2.f32 %v115_v30 }
  0x43   :  { %165 = vpow2.f32 %v117_v31 }
  0x4c   :  { %v164_v32 = vpop.eup %163 }
  0x4d   :  { %v166_v33 = vpop.eup %165  ;;  %v119_v34 = vsub.f32 1.0, %v164_v32 }
  0x4e   :  { %v120_v35 = vsub.f32 1.0, %v166_v33 }
  0x4f   :  { %v121_v36 = vmul.f32 %v119_v34, %v119_v34 }
  0x50   :  { %v122_v37 = vmul.f32 %v120_v35, %v120_v35 }
  0x51   :  { %v123_v38 = vmul.f32 %v121_v36, %v111_v26 }
  0x52   :  { %v124_v39 = vmul.f32 %v122_v37, %v112_v27 }
  0x54   :  { %v125_v40 = vadd.f32 %v124_v39, %v123_v38 }
  0x56   :  { %128 = vst [vmem:[#allocation7] sm:$0xff] %v125_v40 }
  0x57   :  { %222 = shalt.err (!%p219_p6)
}
  0x58   :  { %s223_s10 = scalar_lea.hbm %s297_s2, 128 }
  0x59   :  { %p224_p7 = scmp.ne.s32.totalorder %s297_s2, %s223_s10  ;;  %p227_p8 = scmp.lt.u32.totalorder %s223_s10, %s297_s2 }
  0x5b   :  { %p229_p9 = pnand %p227_p8, %p224_p7 }
  0x5d   :  { %232 = shalt.err (!%p229_p9)
}
  0x5e   :  { %138 = dma.vmem_to_hbm [thread:$0]  %s136_s6, 128, %s297_s2, [#allocation4]  }
  0x5f   :  { %237 = dma.done.wait [#allocation4], 128  }
  0x60   :  { %238 = vsyncadd [#allocation4], 4294967168 }
  0x61   :  { %142 = vsyncpa [#allocation3], 1 }
  0x62   :  { %143 = vsyncpa [#allocation6], 1 }
  0x63   :  { %144 = vsyncpa [#allocation4], 1 }

</bundles_post_ra>
